<compile_context>
chip_gen: v7x
topology: tpu7x:2x2x1
jax: 0.10.0
libtpu: 0.0.40
codegen_flags: <defaults>
</compile_context>

<pallas_src>
import jax
import jax.numpy as jnp
from jax.experimental import pallas as pl
from jax.experimental.pallas import tpu as pltpu

HIDDEN = 64
NUM_LAYERS = 5
FC = 32
CRIT = 16
GW = 3 * HIDDEN          # packed gate width: [i | o | g]  (forget gate dropped)
LANES = 128              # lane-dense width for the fc / head stage and output

# ---- packed-slab row layout (matmul operand blocks are 8-row aligned) -------
ROW_WIH = 0              # 256 rows: layers 1..4 input weights^T, (64, GW) each
ROW_W0 = 256             # 1 row   : layer-0 input-weight row (i/o pre-scaled)
ROW_BIAS = 257           # 5 rows  : per-layer fused bias b_ih+b_hh (i/o scaled)
ROW_FCW = 264            # 64 rows : fc weight^T in lanes 0..31 (rest zero)
ROW_FCB = 328            # 1 row   : fc bias in lanes 0..31
ROW_TAILW = 336          # 128 rows: fused head weights (rows 32..127 are zero)
ROW_TAILB = 464          # 1 row   : fused head bias
ROW_C2W = 465            # 1 row   : critic.2 weights at lanes 2..17
ROW_OUTB = 466           # 1 row   : critic.2 bias at lane 2
SLAB_ROWS = 472          # padded to a multiple of 8


# --------------------------------------------------------------------------- #
# Kernel
# --------------------------------------------------------------------------- #
def net_kernel(x_ref, w_ref, out_ref):
    # x_ref: SMEM (1,1) -- the last element of the input vector (only row used).
    x = x_ref[0, 0]

    def cell(gates):                                   # gates: (1, GW) = [i|o|g]
        # i/o columns were pre-scaled by 0.5, so one tanh over all 192 lanes
        # gives tanh(z/2) for i,o and tanh(z) for g.  sigmoid(z)=0.5*(tanh(z/2)+1).
        t = jnp.tanh(gates)                            # single EUP pass
        io = 0.5 * t[:, 0:2 * HIDDEN] + 0.5            # (1, 128): i | o
        c = io[:, 0:HIDDEN] * t[:, 2 * HIDDEN:GW]      # c = i*g   (f*c_prev == 0)
        return io[:, HIDDEN:2 * HIDDEN] * jnp.tanh(c)  # h = o*tanh(c)

    # ---- LSTM layer 0: input feature dim is 1 -> scalar * weight-row (pure VPU)
    h = cell(x * w_ref[ROW_W0:ROW_W0 + 1, :] + w_ref[ROW_BIAS:ROW_BIAS + 1, :])

    # ---- LSTM layers 1..4 (h_prev = c_prev = 0 -> only the input matmul remains)
    for l in range(1, NUM_LAYERS):
        w = w_ref[(l - 1) * HIDDEN:l * HIDDEN, :]      # (64, GW)
        b = w_ref[ROW_BIAS + l:ROW_BIAS + l + 1, :]    # (1, GW)
        h = cell(jnp.dot(h, w, preferred_element_type=jnp.float32) + b)

    # ---- fc: Linear(64 -> 32) + ReLU, lane-dense (lanes 32..127 stay zero)
    y = jnp.maximum(
        jnp.dot(h, w_ref[ROW_FCW:ROW_FCW + HIDDEN, 0:LANES],
                preferred_element_type=jnp.float32)
        + w_ref[ROW_FCB:ROW_FCB + 1, 0:LANES], 0.0)    # (1, 128)

    # ---- fused heads: one (128,128) matmul
    #      lane 0 = mean, lane 1 = log_std, lanes 2..17 = critic hidden (pre-ReLU)
    head = (jnp.dot(y, w_ref[ROW_TAILW:ROW_TAILW + LANES, 0:LANES],
                    preferred_element_type=jnp.float32)
            + w_ref[ROW_TAILB:ROW_TAILB + 1, 0:LANES])  # (1, 128)

    # ---- critic second layer as a lane reduction (weights at lanes 2..17)
    v = jnp.sum(jnp.maximum(head, 0.0) * w_ref[ROW_C2W:ROW_C2W + 1, 0:LANES],
                axis=-1, keepdims=True)                # (1, 1)

    # ---- single lane-dense output: mean @ 0, log_std @ 1, v @ 2
    lane = jax.lax.broadcasted_iota(jnp.int32, (1, LANES), 1)
    out_ref[...] = (jnp.where(lane < 2, head, 0.0)
                    + jnp.where(lane == 2, v, 0.0)
                    + w_ref[ROW_OUTB:ROW_OUTB + 1, 0:LANES])  # critic.2 bias @ lane 2


# --------------------------------------------------------------------------- #
# Host wrapper
# --------------------------------------------------------------------------- #
def net_forward(x, slab):
    x_last = x[-1:].astype(jnp.float32).reshape(1, 1)  # only x[N-1] affects outputs
    out = pl.pallas_call(
        net_kernel,
        out_shape=jax.ShapeDtypeStruct((1, LANES), jnp.float32),
        in_specs=[pl.BlockSpec(memory_space=pltpu.MemorySpace.SMEM),
                  pl.BlockSpec(memory_space=pltpu.MemorySpace.VMEM)],
        out_specs=pl.BlockSpec(memory_space=pltpu.MemorySpace.VMEM),
    )(x_last, slab)
    return out[:, 0:1], out[:, 1:2], out[:, 2:3]       # mean, log_std, v  (each (1,1))


# --------------------------------------------------------------------------- #
# Parameter construction (PyTorch-format "raw" params) and packing
# --------------------------------------------------------------------------- #
def init_raw_params(key):
    ks = jax.random.split(key, 32)
    ki = iter(range(32))

    def uni(k, shape, bound):
        return jax.random.uniform(k, shape, jnp.float32, -bound, bound)

    raw = {}
    kb = 1.0 / float(HIDDEN) ** 0.5                    # PyTorch LSTM init bound
    for l in range(NUM_LAYERS):
        in_f = 1 if l == 0 else HIDDEN
        raw[f"weight_ih_l{l}"] = uni(ks[next(ki)], (4 * HIDDEN, in_f), kb)
        raw[f"weight_hh_l{l}"] = uni(ks[next(ki)], (4 * HIDDEN, HIDDEN), kb)
        raw[f"bias_ih_l{l}"] = uni(ks[next(ki)], (4 * HIDDEN,), kb)
        raw[f"bias_hh_l{l}"] = uni(ks[next(ki)], (4 * HIDDEN,), kb)

    def linear(kw, kbias, out_f, in_f):
        bound = 1.0 / float(in_f) ** 0.5
        return uni(kw, (out_f, in_f), bound), uni(kbias, (out_f,), bound)

    raw["fc_w"], raw["fc_b"] = linear(ks[next(ki)], ks[next(ki)], FC, HIDDEN)
    raw["mean_w"], raw["mean_b"] = linear(ks[next(ki)], ks[next(ki)], 1, FC)
    raw["logstd_w"], raw["logstd_b"] = linear(ks[next(ki)], ks[next(ki)], 1, FC)
    raw["c1_w"], raw["c1_b"] = linear(ks[next(ki)], ks[next(ki)], CRIT, FC)
    raw["c2_w"], raw["c2_b"] = linear(ks[next(ki)], ks[next(ki)], 1, CRIT)
    return raw


def _iog(a, scale_io):
    """Select [i, o, g] blocks from PyTorch [i, f, g, o] layout (f dropped).

    If scale_io, pre-multiply the i and o blocks by 0.5 so that the kernel can
    use sigmoid(z) = 0.5*(tanh(z/2)+1) with a single tanh over all gate lanes.
    """
    i = a[0:HIDDEN]
    o = a[3 * HIDDEN:4 * HIDDEN]
    g = a[2 * HIDDEN:3 * HIDDEN]
    if scale_io:
        i = 0.5 * i
        o = 0.5 * o
    return jnp.concatenate([i, o, g], axis=0)


def pack_params(raw):
    slab = jnp.zeros((SLAB_ROWS, GW), jnp.float32)

    # Layers 1..4 input weights, pre-transposed to (in=64, GW), i/o pre-scaled.
    for l in range(1, NUM_LAYERS):
        w = _iog(raw[f"weight_ih_l{l}"], scale_io=True).T          # (64, GW)
        slab = slab.at[(l - 1) * HIDDEN:l * HIDDEN, :].set(w)

    # Layer-0 input-weight row (feature dim 1) and fused biases, i/o pre-scaled.
    slab = slab.at[ROW_W0, :].set(_iog(raw["weight_ih_l0"], scale_io=True)[:, 0])
    for l in range(NUM_LAYERS):
        b = _iog(raw[f"bias_ih_l{l}"] + raw[f"bias_hh_l{l}"], scale_io=True)
        slab = slab.at[ROW_BIAS + l, :].set(b)

    # fc (lanes 0..31; lanes 32..191 stay zero -> lane-dense y after ReLU).
    slab = slab.at[ROW_FCW:ROW_FCW + HIDDEN, 0:FC].set(raw["fc_w"].T)
    slab = slab.at[ROW_FCB, 0:FC].set(raw["fc_b"])

    # Fused heads: contracting rows 0..31 of a 128-row block (rows 32..127 zero).
    slab = slab.at[ROW_TAILW:ROW_TAILW + FC, 0].set(raw["mean_w"][0])        # lane 0
    slab = slab.at[ROW_TAILW:ROW_TAILW + FC, 1].set(raw["logstd_w"][0])      # lane 1
    slab = slab.at[ROW_TAILW:ROW_TAILW + FC, 2:2 + CRIT].set(raw["c1_w"].T)  # lanes 2..17
    slab = slab.at[ROW_TAILB, 0].set(raw["mean_b"][0])
    slab = slab.at[ROW_TAILB, 1].set(raw["logstd_b"][0])
    slab = slab.at[ROW_TAILB, 2:2 + CRIT].set(raw["c1_b"])
    slab = slab.at[ROW_C2W, 2:2 + CRIT].set(raw["c2_w"][0])                  # critic.2 w
    slab = slab.at[ROW_OUTB, 2].set(raw["c2_b"][0])                          # critic.2 b
    return slab


# --------------------------------------------------------------------------- #
# Pure-JAX full-fidelity reference (un-optimized LSTM math, for correctness)
# --------------------------------------------------------------------------- #
def reference_forward(x, raw):
    n = x.shape[0]
    layer_in = x.astype(jnp.float32).reshape(n, 1)     # single time step, batch=n
    for l in range(NUM_LAYERS):
        w_ih = raw[f"weight_ih_l{l}"]
        w_hh = raw[f"weight_hh_l{l}"]
        b = raw[f"bias_ih_l{l}"] + raw[f"bias_hh_l{l}"]
        h0 = jnp.zeros((n, HIDDEN), jnp.float32)
        c0 = jnp.zeros((n, HIDDEN), jnp.float32)
        gates = layer_in @ w_ih.T + h0 @ w_hh.T + b
        i = jax.nn.sigmoid(gates[:, 0:HIDDEN])
        f = jax.nn.sigmoid(gates[:, HIDDEN:2 * HIDDEN])
        g = jnp.tanh(gates[:, 2 * HIDDEN:3 * HIDDEN])
        o = jax.nn.sigmoid(gates[:, 3 * HIDDEN:])
        c = f * c0 + i * g
        layer_in = o * jnp.tanh(c)
    feat = layer_in[n - 1:n]                            # lstm_out[:, -1, :]
    y = jnp.maximum(feat @ raw["fc_w"].T + raw["fc_b"], 0.0)
    mean = y @ raw["mean_w"].T + raw["mean_b"]
    log_std = y @ raw["logstd_w"].T + raw["logstd_b"]
    c1 = jnp.maximum(y @ raw["c1_w"].T + raw["c1_b"], 0.0)
    v = c1 @ raw["c2_w"].T + raw["c2_b"]
    return mean, log_std, v


if __name__ == "__main__":
    key = jax.random.PRNGKey(0)
    pkey, xkey = jax.random.split(key)
    raw = init_raw_params(pkey)
    slab = pack_params(raw)

    N = 8                                   # x is a length-N vector, as in the module
    x = jax.random.normal(xkey, (N,), jnp.float32)

    mean, log_std, v = net_forward(x, slab)
    jax.block_until_ready((mean, log_std, v))

    ref_mean, ref_log_std, ref_v = reference_forward(x, raw)
    assert mean.shape == (1, 1) and log_std.shape == (1, 1) and v.shape == (1, 1)
    assert jnp.allclose(mean, ref_mean, atol=1e-5, rtol=1e-4)
    assert jnp.allclose(log_std, ref_log_std, atol=1e-5, rtol=1e-4)
    assert jnp.allclose(v, ref_v, atol=1e-5, rtol=1e-4)

    print("KERNEL_OK")
</pallas_src>

<mosaic_0001>
module attributes {stable_mosaic.version = 11 : i64} {
  func.func @net_kernel(%arg0: memref<1x1xf32, #tpu.memory_space<smem>>, %arg1: memref<472x192xf32, #tpu.memory_space<vmem>>, %arg2: memref<1x128xf32, #tpu.memory_space<vmem>>) attributes {dimension_semantics = [], scalar_prefetch = 0 : i64, scratch_operands = 0 : i64, tpu.core_type = #tpu.core_type<tc>} {
    %c0 = arith.constant 0 : index
    %c0_0 = arith.constant 0 : index
    %0 = memref.load %arg0[%c0, %c0_0] : memref<1x1xf32, #tpu.memory_space<smem>>
    %c256 = arith.constant 256 : index
    %c0_1 = arith.constant 0 : index
    %1 = vector.load %arg1[%c256, %c0_1] : memref<472x192xf32, #tpu.memory_space<vmem>>, vector<1x192xf32>
    %2 = vector.broadcast %0 : f32 to vector<1x192xf32>
    %3 = arith.mulf %2, %1 : vector<1x192xf32>
    %c257 = arith.constant 257 : index
    %c0_2 = arith.constant 0 : index
    %4 = vector.load %arg1[%c257, %c0_2] : memref<472x192xf32, #tpu.memory_space<vmem>>, vector<1x192xf32>
    %5 = arith.addf %3, %4 : vector<1x192xf32>
    %6 = math.tanh %5 : vector<1x192xf32>
    %7 = vector.extract_strided_slice %6 {offsets = [0, 0], sizes = [1, 128], strides = [1, 1]} : vector<1x192xf32> to vector<1x128xf32>
    %cst = arith.constant 5.000000e-01 : f32
    %8 = vector.broadcast %cst : f32 to vector<1x128xf32>
    %9 = arith.mulf %8, %7 : vector<1x128xf32>
    %cst_3 = arith.constant 5.000000e-01 : f32
    %10 = vector.broadcast %cst_3 : f32 to vector<1x128xf32>
    %11 = arith.addf %9, %10 : vector<1x128xf32>
    %12 = vector.extract_strided_slice %11 {offsets = [0, 0], sizes = [1, 64], strides = [1, 1]} : vector<1x128xf32> to vector<1x64xf32>
    %13 = vector.extract_strided_slice %6 {offsets = [0, 128], sizes = [1, 64], strides = [1, 1]} : vector<1x192xf32> to vector<1x64xf32>
    %14 = arith.mulf %12, %13 : vector<1x64xf32>
    %15 = vector.extract_strided_slice %11 {offsets = [0, 64], sizes = [1, 64], strides = [1, 1]} : vector<1x128xf32> to vector<1x64xf32>
    %16 = math.tanh %14 : vector<1x64xf32>
    %17 = arith.mulf %15, %16 : vector<1x64xf32>
    %c0_4 = arith.constant 0 : index
    %c0_5 = arith.constant 0 : index
    %18 = vector.load %arg1[%c0_4, %c0_5] : memref<472x192xf32, #tpu.memory_space<vmem>>, vector<64x192xf32>
    %c258 = arith.constant 258 : index
    %c0_6 = arith.constant 0 : index
    %19 = vector.load %arg1[%c258, %c0_6] : memref<472x192xf32, #tpu.memory_space<vmem>>, vector<1x192xf32>
    %cst_7 = arith.constant dense<0.000000e+00> : vector<1x192xf32>
    %20 = tpu.matmul %17, %18, %cst_7 {dimension_numbers = #tpu.dot_dimension_numbers<[1], [0], [0], [1], [0, 0, 1, 1], [], []>} : vector<1x64xf32>, vector<64x192xf32>, vector<1x192xf32> -> vector<1x192xf32>
    %21 = arith.addf %20, %19 : vector<1x192xf32>
    %22 = math.tanh %21 : vector<1x192xf32>
    %23 = vector.extract_strided_slice %22 {offsets = [0, 0], sizes = [1, 128], strides = [1, 1]} : vector<1x192xf32> to vector<1x128xf32>
    %cst_8 = arith.constant 5.000000e-01 : f32
    %24 = vector.broadcast %cst_8 : f32 to vector<1x128xf32>
    %25 = arith.mulf %24, %23 : vector<1x128xf32>
    %cst_9 = arith.constant 5.000000e-01 : f32
    %26 = vector.broadcast %cst_9 : f32 to vector<1x128xf32>
    %27 = arith.addf %25, %26 : vector<1x128xf32>
    %28 = vector.extract_strided_slice %27 {offsets = [0, 0], sizes = [1, 64], strides = [1, 1]} : vector<1x128xf32> to vector<1x64xf32>
    %29 = vector.extract_strided_slice %22 {offsets = [0, 128], sizes = [1, 64], strides = [1, 1]} : vector<1x192xf32> to vector<1x64xf32>
    %30 = arith.mulf %28, %29 : vector<1x64xf32>
    %31 = vector.extract_strided_slice %27 {offsets = [0, 64], sizes = [1, 64], strides = [1, 1]} : vector<1x128xf32> to vector<1x64xf32>
    %32 = math.tanh %30 : vector<1x64xf32>
    %33 = arith.mulf %31, %32 : vector<1x64xf32>
    %c64 = arith.constant 64 : index
    %c0_10 = arith.constant 0 : index
    %34 = vector.load %arg1[%c64, %c0_10] : memref<472x192xf32, #tpu.memory_space<vmem>>, vector<64x192xf32>
    %c259 = arith.constant 259 : index
    %c0_11 = arith.constant 0 : index
    %35 = vector.load %arg1[%c259, %c0_11] : memref<472x192xf32, #tpu.memory_space<vmem>>, vector<1x192xf32>
    %cst_12 = arith.constant dense<0.000000e+00> : vector<1x192xf32>
    %36 = tpu.matmul %33, %34, %cst_12 {dimension_numbers = #tpu.dot_dimension_numbers<[1], [0], [0], [1], [0, 0, 1, 1], [], []>} : vector<1x64xf32>, vector<64x192xf32>, vector<1x192xf32> -> vector<1x192xf32>
    %37 = arith.addf %36, %35 : vector<1x192xf32>
    %38 = math.tanh %37 : vector<1x192xf32>
    %39 = vector.extract_strided_slice %38 {offsets = [0, 0], sizes = [1, 128], strides = [1, 1]} : vector<1x192xf32> to vector<1x128xf32>
    %cst_13 = arith.constant 5.000000e-01 : f32
    %40 = vector.broadcast %cst_13 : f32 to vector<1x128xf32>
    %41 = arith.mulf %40, %39 : vector<1x128xf32>
    %cst_14 = arith.constant 5.000000e-01 : f32
    %42 = vector.broadcast %cst_14 : f32 to vector<1x128xf32>
    %43 = arith.addf %41, %42 : vector<1x128xf32>
    %44 = vector.extract_strided_slice %43 {offsets = [0, 0], sizes = [1, 64], strides = [1, 1]} : vector<1x128xf32> to vector<1x64xf32>
    %45 = vector.extract_strided_slice %38 {offsets = [0, 128], sizes = [1, 64], strides = [1, 1]} : vector<1x192xf32> to vector<1x64xf32>
    %46 = arith.mulf %44, %45 : vector<1x64xf32>
    %47 = vector.extract_strided_slice %43 {offsets = [0, 64], sizes = [1, 64], strides = [1, 1]} : vector<1x128xf32> to vector<1x64xf32>
    %48 = math.tanh %46 : vector<1x64xf32>
    %49 = arith.mulf %47, %48 : vector<1x64xf32>
    %c128 = arith.constant 128 : index
    %c0_15 = arith.constant 0 : index
    %50 = vector.load %arg1[%c128, %c0_15] : memref<472x192xf32, #tpu.memory_space<vmem>>, vector<64x192xf32>
    %c260 = arith.constant 260 : index
    %c0_16 = arith.constant 0 : index
    %51 = vector.load %arg1[%c260, %c0_16] : memref<472x192xf32, #tpu.memory_space<vmem>>, vector<1x192xf32>
    %cst_17 = arith.constant dense<0.000000e+00> : vector<1x192xf32>
    %52 = tpu.matmul %49, %50, %cst_17 {dimension_numbers = #tpu.dot_dimension_numbers<[1], [0], [0], [1], [0, 0, 1, 1], [], []>} : vector<1x64xf32>, vector<64x192xf32>, vector<1x192xf32> -> vector<1x192xf32>
    %53 = arith.addf %52, %51 : vector<1x192xf32>
    %54 = math.tanh %53 : vector<1x192xf32>
    %55 = vector.extract_strided_slice %54 {offsets = [0, 0], sizes = [1, 128], strides = [1, 1]} : vector<1x192xf32> to vector<1x128xf32>
    %cst_18 = arith.constant 5.000000e-01 : f32
    %56 = vector.broadcast %cst_18 : f32 to vector<1x128xf32>
    %57 = arith.mulf %56, %55 : vector<1x128xf32>
    %cst_19 = arith.constant 5.000000e-01 : f32
    %58 = vector.broadcast %cst_19 : f32 to vector<1x128xf32>
    %59 = arith.addf %57, %58 : vector<1x128xf32>
    %60 = vector.extract_strided_slice %59 {offsets = [0, 0], sizes = [1, 64], strides = [1, 1]} : vector<1x128xf32> to vector<1x64xf32>
    %61 = vector.extract_strided_slice %54 {offsets = [0, 128], sizes = [1, 64], strides = [1, 1]} : vector<1x192xf32> to vector<1x64xf32>
    %62 = arith.mulf %60, %61 : vector<1x64xf32>
    %63 = vector.extract_strided_slice %59 {offsets = [0, 64], sizes = [1, 64], strides = [1, 1]} : vector<1x128xf32> to vector<1x64xf32>
    %64 = math.tanh %62 : vector<1x64xf32>
    %65 = arith.mulf %63, %64 : vector<1x64xf32>
    %c192 = arith.constant 192 : index
    %c0_20 = arith.constant 0 : index
    %66 = vector.load %arg1[%c192, %c0_20] : memref<472x192xf32, #tpu.memory_space<vmem>>, vector<64x192xf32>
    %c261 = arith.constant 261 : index
    %c0_21 = arith.constant 0 : index
    %67 = vector.load %arg1[%c261, %c0_21] : memref<472x192xf32, #tpu.memory_space<vmem>>, vector<1x192xf32>
    %cst_22 = arith.constant dense<0.000000e+00> : vector<1x192xf32>
    %68 = tpu.matmul %65, %66, %cst_22 {dimension_numbers = #tpu.dot_dimension_numbers<[1], [0], [0], [1], [0, 0, 1, 1], [], []>} : vector<1x64xf32>, vector<64x192xf32>, vector<1x192xf32> -> vector<1x192xf32>
    %69 = arith.addf %68, %67 : vector<1x192xf32>
    %70 = math.tanh %69 : vector<1x192xf32>
    %71 = vector.extract_strided_slice %70 {offsets = [0, 0], sizes = [1, 128], strides = [1, 1]} : vector<1x192xf32> to vector<1x128xf32>
    %cst_23 = arith.constant 5.000000e-01 : f32
    %72 = vector.broadcast %cst_23 : f32 to vector<1x128xf32>
    %73 = arith.mulf %72, %71 : vector<1x128xf32>
    %cst_24 = arith.constant 5.000000e-01 : f32
    %74 = vector.broadcast %cst_24 : f32 to vector<1x128xf32>
    %75 = arith.addf %73, %74 : vector<1x128xf32>
    %76 = vector.extract_strided_slice %75 {offsets = [0, 0], sizes = [1, 64], strides = [1, 1]} : vector<1x128xf32> to vector<1x64xf32>
    %77 = vector.extract_strided_slice %70 {offsets = [0, 128], sizes = [1, 64], strides = [1, 1]} : vector<1x192xf32> to vector<1x64xf32>
    %78 = arith.mulf %76, %77 : vector<1x64xf32>
    %79 = vector.extract_strided_slice %75 {offsets = [0, 64], sizes = [1, 64], strides = [1, 1]} : vector<1x128xf32> to vector<1x64xf32>
    %80 = math.tanh %78 : vector<1x64xf32>
    %81 = arith.mulf %79, %80 : vector<1x64xf32>
    %c264 = arith.constant 264 : index
    %c0_25 = arith.constant 0 : index
    %82 = vector.load %arg1[%c264, %c0_25] : memref<472x192xf32, #tpu.memory_space<vmem>>, vector<64x128xf32>
    %cst_26 = arith.constant dense<0.000000e+00> : vector<1x128xf32>
    %83 = tpu.matmul %81, %82, %cst_26 {dimension_numbers = #tpu.dot_dimension_numbers<[1], [0], [0], [1], [0, 0, 1, 1], [], []>} : vector<1x64xf32>, vector<64x128xf32>, vector<1x128xf32> -> vector<1x128xf32>
    %c328 = arith.constant 328 : index
    %c0_27 = arith.constant 0 : index
    %84 = vector.load %arg1[%c328, %c0_27] : memref<472x192xf32, #tpu.memory_space<vmem>>, vector<1x128xf32>
    %85 = arith.addf %83, %84 : vector<1x128xf32>
    %cst_28 = arith.constant 0.000000e+00 : f32
    %86 = vector.broadcast %cst_28 : f32 to vector<1x128xf32>
    %87 = arith.maximumf %85, %86 : vector<1x128xf32>
    %c336 = arith.constant 336 : index
    %c0_29 = arith.constant 0 : index
    %88 = vector.load %arg1[%c336, %c0_29] : memref<472x192xf32, #tpu.memory_space<vmem>>, vector<128x128xf32>
    %cst_30 = arith.constant dense<0.000000e+00> : vector<1x128xf32>
    %89 = tpu.matmul %87, %88, %cst_30 {dimension_numbers = #tpu.dot_dimension_numbers<[1], [0], [0], [1], [0, 0, 1, 1], [], []>} : vector<1x128xf32>, vector<128x128xf32>, vector<1x128xf32> -> vector<1x128xf32>
    %c464 = arith.constant 464 : index
    %c0_31 = arith.constant 0 : index
    %90 = vector.load %arg1[%c464, %c0_31] : memref<472x192xf32, #tpu.memory_space<vmem>>, vector<1x128xf32>
    %91 = arith.addf %89, %90 : vector<1x128xf32>
    %cst_32 = arith.constant 0.000000e+00 : f32
    %92 = vector.broadcast %cst_32 : f32 to vector<1x128xf32>
    %93 = arith.maximumf %91, %92 : vector<1x128xf32>
    %c465 = arith.constant 465 : index
    %c0_33 = arith.constant 0 : index
    %94 = vector.load %arg1[%c465, %c0_33] : memref<472x192xf32, #tpu.memory_space<vmem>>, vector<1x128xf32>
    %95 = arith.mulf %93, %94 : vector<1x128xf32>
    %cst_34 = arith.constant dense<0.000000e+00> : vector<1xf32>
    %96 = vector.multi_reduction <add>, %95, %cst_34 [1] : vector<1x128xf32> to vector<1xf32>
    %97 = vector.shape_cast %96 : vector<1xf32> to vector<1x1xf32>
    %98 = tpu.iota {dimensions = array<i32: 1>} : vector<1x128xi32>
    %c2_i32 = arith.constant 2 : i32
    %99 = vector.broadcast %c2_i32 : i32 to vector<1x128xi32>
    %100 = arith.cmpi slt, %98, %99 : vector<1x128xi32>
    %cst_35 = arith.constant 0.000000e+00 : f32
    %101 = vector.broadcast %cst_35 : f32 to vector<1x128xf32>
    %102 = arith.select %100, %91, %101 : vector<1x128xi1>, vector<1x128xf32>
    %c2_i32_36 = arith.constant 2 : i32
    %103 = vector.broadcast %c2_i32_36 : i32 to vector<1x128xi32>
    %104 = arith.cmpi eq, %98, %103 : vector<1x128xi32>
    %cst_37 = arith.constant 0.000000e+00 : f32
    %105 = vector.shape_cast %97 : vector<1x1xf32> to vector<1x1xf32>
    %106 = vector.broadcast %105 : vector<1x1xf32> to vector<1x128xf32>
    %107 = vector.broadcast %cst_37 : f32 to vector<1x128xf32>
    %108 = arith.select %104, %106, %107 : vector<1x128xi1>, vector<1x128xf32>
    %109 = arith.addf %102, %108 : vector<1x128xf32>
    %c466 = arith.constant 466 : index
    %c0_38 = arith.constant 0 : index
    %110 = vector.load %arg1[%c466, %c0_38] : memref<472x192xf32, #tpu.memory_space<vmem>>, vector<1x128xf32>
    %111 = arith.addf %109, %110 : vector<1x128xf32>
    %c0_39 = arith.constant 0 : index
    %c0_40 = arith.constant 0 : index
    %112 = vector.load %arg2[%c0_39, %c0_40] : memref<1x128xf32, #tpu.memory_space<vmem>>, vector<1x128xf32>
    tpu.vector_store %arg2[%c0_39, %c0_40], %111 {strides = array<i32>} : memref<1x128xf32, #tpu.memory_space<vmem>>, vector<1x128xf32>,
    return
  }
}

</mosaic_0001>

<bundles_post_ra>
// kernel: tpu_custom_call.1
= control target key start
LH: loop header
LB: loop body
LE: loop exit
PB: predicated region body
PF: predicated region fallthrough
CT: control target
= control target key end

     0   :  { %s1319_s0 = inlined_call_operand.<no memory space> [shape: f32[1,1], index: 0, kind: input, shape index: {}]   ;;  %s1320_s1 = inlined_call_operand.vmem [shape: f32[472,192], index: 1, kind: input, shape index: {}]   ;;  %s1321_s2 = inlined_call_operand.hbm [shape: f32[1,128], index: 2, kind: output, shape index: {}]  }
   0x1   :  { %v706_v0 = vld [vmem:[%s1320_s1 + $0x200] ss:$8 sm:$0x3]  ;;  %v16_v1 = vstv %s1319_s0  ;;  %v707_v2 = vld [vmem:[%s1320_s1 + $0x201] ss:$8 sm:$0x3] }
   0x2   :  { %v17_v3 = vmul.f32 %v706_v0, %v16_v1 }
   0x3   :  { %8 = vsyncpa [#allocation4], 0  ;;  %v35_v10 = vld [vmem:[%s1320_s1 + $0x8] sm:$0xff]  ;;  %v37_v11 = vld [vmem:[%s1320_s1 + $0x18] sm:$0xff]  ;;  %v954_v17 = vmov 0.0   ;;  %s955_s14 = smov 64   ;;  %v53_v36 = vlaneseq }
   0x4   :  { %v20_v4 = vadd.f32 %v707_v2, %v17_v3  ;;  %v34_v12 = vld [vmem:[%s1320_s1] sm:$0xff]  ;;  %v797_v13 = vpack.c.bf16 %v37_v11, %v35_v10  ;;  %v36_v14 = vld [vmem:[%s1320_s1 + $0x10] sm:$0xff]  ;;  %v39_v15 = vld [vmem:[%s1320_s1 + $0x28] sm:$0xff]  ;;  %137 = vmatprep.mubr.f32.mxu0 %v954_v17  ;;  %253 = vmatprep.mubr.f32.mxu1 %v954_v17  ;;  %vm70_vm0 = vcmask 523264   ;;  %vm957_vm1 = vmmov 0   ;;  %s958_s9 = smov [#allocation3]  }
   0x5   :  { %v41_v16 = vld [vmem:[%s1320_s1 + $0x38] sm:$0xff]  ;;  %v799_v18 = vpack.c.bf16 %v36_v14, %v34_v12  ;;  %v38_v20 = vld [vmem:[%s1320_s1 + $0x20] sm:$0xff]  ;;  %v40_v21 = vld [vmem:[%s1320_s1 + $0x30] sm:$0xff]  ;;  %v54_v37 = vshrl.u32 %v53_v36, 7  ;;  %vm678_vm2 = vcmask 1040384   ;;  %s698_s10 = sshll.u32 %s958_s9, 4  ;;  %s699_s10 = int_to_ptr.vmem [resolvable:$true] %s698_s10 }
   0x6   :  { %902 = vtanh.f32 %v20_v4  ;;  %v801_v19 = vpack.c.bf16 %v41_v16, %v39_v15  ;;  %v43_v22 = vld [vmem:[%s1320_s1 + $0x48] sm:$0xff]  ;;  %798 = vmatprep.subr.bf16.mxu0 %v797_v13  ;;  %v45_v23 = vld [vmem:[%s1320_s1 + $0x58] sm:$0xff]  ;;  %v803_v24 = vpack.c.bf16 %v40_v21, %v38_v20  ;;  %v42_v26 = vld [vmem:[%s1320_s1 + $0x40] sm:$0xff]  ;;  %s930_s11 = scalar_lea.vmem %s699_s10, 16  ;;  %s934_s12 = scalar_lea.vmem %s699_s10, 32 }
   0x7   :  { %800 = vmatpush1.bf16.msra.mxu0 %v799_v18  ;;  %v805_v25 = vpack.c.bf16 %v45_v23, %v43_v22  ;;  %v44_v27 = vld [vmem:[%s1320_s1 + $0x50] sm:$0xff]  ;;  %v47_v28 = vld [vmem:[%s1320_s1 + $0x68] sm:$0xff]  ;;  %v49_v29 = vld [vmem:[%s1320_s1 + $0x78] sm:$0xff]  ;;  %v1035_v38 = vsub.s32 0, %v54_v37  ;;  %v1044_v44 = vsub.s32 1, %v54_v37  ;;  %p931_p0 = scmp.ne.s32.totalorder %s699_s10, %s930_s11  ;;  %p935_p1 = scmp.lt.s32.totalorder %s699_s10, %s699_s10 }
   0x8   :  { %802 = vmatprep.subr.bf16.mxu0 %v801_v19  ;;  %v807_v31 = vpack.c.bf16 %v44_v27, %v42_v26  ;;  %v809_v32 = vpack.c.bf16 %v49_v29, %v47_v28  ;;  %v46_v33 = vld [vmem:[%s1320_s1 + $0x60] sm:$0xff]  ;;  %v48_v34 = vld [vmem:[%s1320_s1 + $0x70] sm:$0xff]  ;;  %v156_v56 = vld [vmem:[%s1320_s1 + $0x88] sm:$0xff]  ;;  %p936_p2 = scmp.lt.s32.totalorder %s934_s12, %s930_s11 }
   0x9   :  { %v811_v35 = vpack.c.bf16 %v48_v34, %v46_v33  ;;  %v708_v43 = vld [vmem:[%s1320_s1 + $0x202] ss:$8 sm:$0x3]  ;;  %v158_v57 = vld [vmem:[%s1320_s1 + $0x98] sm:$0xff]  ;;  %v157_v60 = vld [vmem:[%s1320_s1 + $0x90] sm:$0xff] }
   0xa   :  { %v63_v45 = vrot.slane %v708_v43, %v1035_v38  ;;  %v67_v46 = vrot.slane %v708_v43, %v1044_v44  ;;  %v155_v58 = vld [vmem:[%s1320_s1 + $0x80] sm:$0xff]  ;;  %v813_v59 = vpack.c.bf16 %v158_v57, %v156_v56  ;;  %v160_v61 = vld [vmem:[%s1320_s1 + $0xa8] sm:$0xff]  ;;  %v162_v62 = vld [vmem:[%s1320_s1 + $0xb8] sm:$0xff]  ;;  %p937_p3 = por %p936_p2, %p935_p1 }
   0xb   :  { %804 = vmatpush1.bf16.msra.mxu0 %v803_v24  ;;  %v815_v63 = vpack.c.bf16 %v157_v60, %v155_v58  ;;  %v817_v0 = vpack.c.bf16 %v162_v62, %v160_v61  ;;  %v159_v1 = vld [vmem:[%s1320_s1 + $0xa0] sm:$0xff]  ;;  %v161_v2 = vld [vmem:[%s1320_s1 + $0xb0] sm:$0xff]  ;;  %v164_v3 = vld [vmem:[%s1320_s1 + $0xc8] sm:$0xff] }
   0xc   :  { %806 = vmatprep.subr.bf16.mxu0 %v805_v25  ;;  %814 = vmatprep.subr.bf16.mxu1 %v813_v59  ;;  %v166_v4 = vld [vmem:[%s1320_s1 + $0xd8] sm:$0xff]  ;;  %v167_v13 = vld [vmem:[%s1320_s1 + $0xe0] sm:$0xff]  ;;  %v169_v14 = vld [vmem:[%s1320_s1 + $0xf0] sm:$0xff]  ;;  %p938_p4 = pnand %p937_p3, %p931_p0 }
   0xd   :  { %816 = vmatpush1.bf16.msra.mxu1 %v815_v63  ;;  %v170_v10 = vld [vmem:[%s1320_s1 + $0xf8] sm:$0xff]  ;;  %v827_v16 = vpack.c.bf16 %v169_v14, %v167_v13  ;;  %v710_v21 = vld [vmem:[%s1320_s1 + $0x203] ss:$8 sm:$0x3]  ;;  %v285_v58 = vld [vmem:[%s1320_s1 + $0x170] sm:$0xff] }
   0xe   :  { %818 = vmatprep.subr.bf16.mxu1 %v817_v0  ;;  %v180_v22 = vrot.slane %v710_v21, %v1035_v38  ;;  %v184_v23 = vrot.slane %v710_v21, %v1044_v44  ;;  %v272_v33 = vld [vmem:[%s1320_s1 + $0x108] sm:$0xff]  ;;  %v274_v34 = vld [vmem:[%s1320_s1 + $0x118] sm:$0xff]  ;;  %v283_v57 = vld [vmem:[%s1320_s1 + $0x160] sm:$0xff] }
   0xf   :  { %808 = vmatpush1.bf16.msra.mxu0 %v807_v31  ;;  %v829_v37 = vpack.c.bf16 %v274_v34, %v272_v33  ;;  %v843_v60 = vpack.c.bf16 %v285_v58, %v283_v57  ;;  %v712_v0 = vld [vmem:[%s1320_s1 + $0x204] ss:$8 sm:$0x3]  ;;  %v390_v13 = vld [vmem:[%s1320_s1 + $0x198] sm:$0xff]  ;;  %v956_v57 = vmov 0.0|0.0  }
  0x10   :  { %v903_v5 = vpop.eup %902  ;;  %810 = vmatprep.subr.bf16.mxu0 %v809_v32  ;;  %v387_v14 = vld [vmem:[%s1320_s1 + $0x180] sm:$0xff] }
  0x11   :  { %v22_v6 = vmul.f32 0.5, %v903_v5  ;;  %v25_v7 = vrot.slane %v903_v5, 1  ;;  %v819_v5 = vpack.c.bf16 %v161_v2, %v159_v1  ;;  %v296_v1 = vrot.slane %v712_v0, %v1035_v38  ;;  %v399_v34 = vld [vmem:[%s1320_s1 + $0x1e0] sm:$0xff] }
  0x12   :  { %v300_v2 = vrot.slane %v712_v0, %v1044_v44  ;;  %v509_v0 = vld [vmem:[%s1320_s1 + $0x270] sm:$0xff] }
  0x13   :  { %v23_v8 = vadd.f32 0.5, %v22_v6  ;;  %812 = vmatpush1.bf16.msra.mxu0 %v811_v35  ;;  %v821_v6 = vpack.c.bf16 %v166_v4, %v164_v3  ;;  %820 = vmatpush1.bf16.msra.mxu1 %v819_v5  ;;  %v271_v35 = vld [vmem:[%s1320_s1 + $0x100] sm:$0xff] }
  0x14   :  { %830 = vmatprep.subr.bf16.mxu0 %v829_v37 }
  0x15   :  { %v27_v9 = vmul.f32 %v25_v7, %v23_v8  ;;  %v163_v7 = vld [vmem:[%s1320_s1 + $0xc0] sm:$0xff]  ;;  %822 = vmatprep.subr.bf16.mxu1 %v821_v6 }
  0x17   :  { %904 = vtanh.f32 %v27_v9  ;;  %v168_v9 = vld [vmem:[%s1320_s1 + $0xe8] sm:$0xff] }
  0x18   :  { %v825_v12 = vpack.c.bf16 %v170_v10, %v168_v9 }
  0x21   :  { %v905_v30 = vpop.eup %904 }
  0x22   :  { %30 = vrot.lane.b32.xlu0 %v905_v30, %s955_s14 }
  0x94   :  { %v31_v39 = vpop.permute.xlu0 %30 }
  0x95   :  { %v33_v40 = vmul.f32 %v31_v39, %v23_v8  ;;  %v165_v8 = vld [vmem:[%s1320_s1 + $0xd0] sm:$0xff] }
  0x96   :  { %v823_v11 = vpack.c.bf16 %v165_v8, %v163_v7  ;;  %v273_v39 = vld [vmem:[%s1320_s1 + $0x110] sm:$0xff] }
  0x97   :  { %v56_v41 = vrot.slane %v33_v40, %v1035_v38  ;;  %v276_v40 = vld [vmem:[%s1320_s1 + $0x128] sm:$0xff] }
  0x98   :  { %824 = vmatpush1.bf16.msra.mxu1 %v823_v11 }
  0x99   :  { %57 = vrot.lane.b32.xlu0 %v56_v41, %s955_s14  ;;  %826 = vmatprep.subr.bf16.mxu1 %v825_v12  ;;  %v278_v41 = vld [vmem:[%s1320_s1 + $0x138] sm:$0xff]  ;;  %v388_v12 = vld [vmem:[%s1320_s1 + $0x188] sm:$0xff] }
  0x9a   :  { %v833_v43 = vpack.c.bf16 %v278_v41, %v276_v40 }
  0x9c   :  { %828 = vmatpush1.bf16.msra.mxu1 %v827_v16  ;;  %v389_v16 = vld [vmem:[%s1320_s1 + $0x190] sm:$0xff] }
 0x10b   :  { %v58_v42 = vpop.permute.xlu0 %57 }
 0x10c   :  { %709 = vmatmul.mubr.msk.f32.vlgmr.msra.gmra.mrb[0].mxu0 %vm70_vm0, %v58_v42  ;;  %v831_v42 = vpack.c.bf16 %v273_v39, %v271_v35  ;;  %v401_v35 = vld [vmem:[%s1320_s1 + $0x1f0] sm:$0xff] }
 0x10d   :  { %369 = vmatprep.mubr.f32.mxu0 %v954_v17  ;;  %v859_v39 = vpack.c.bf16 %v401_v35, %v399_v34 }
 0x10e   :  { %832 = vmatpush1.bf16.msra.mxu0 %v831_v42 }
 0x10f   :  { %834 = vmatprep.subr.bf16.mxu0 %v833_v43  ;;  %v714_v43 = vld [vmem:[%s1320_s1 + $0x205] ss:$8 sm:$0x3] }
 0x1df   :  { %v139_v47 = vpop.f32.mrb[0].mxu0 }
 0x1e0   :  { %v140_v48 = vadd.f32 %v139_v47, %v63_v45  ;;  %v141_v49 = vpop.f32.mrb[1].mxu0  ;;  %v275_v45 = vld [vmem:[%s1320_s1 + $0x120] sm:$0xff]  ;;  %v280_v47 = vld [vmem:[%s1320_s1 + $0x148] sm:$0xff] }
 0x1e1   :  { %v142_v50 = vadd.f32 %v141_v49, %v67_v46  ;;  %v277_v46 = vld [vmem:[%s1320_s1 + $0x130] sm:$0xff] }
 0x1e2   :  { %906 = vtanh.f32 %v140_v48  ;;  %v282_v48 = vld [vmem:[%s1320_s1 + $0x158] sm:$0xff]  ;;  %v835_v49 = vpack.c.bf16 %v277_v46, %v275_v45  ;;  %v412_v45 = vrot.slane %v714_v43, %v1035_v38  ;;  %v416_v46 = vrot.slane %v714_v43, %v1044_v44  ;;  %v504_v38 = vld [vmem:[%s1320_s1 + $0x220] sm:$0xff]  ;;  %v505_v44 = vld [vmem:[%s1320_s1 + $0x230] sm:$0xff] }
 0x1e3   :  { %908 = vtanh.f32 %v142_v50  ;;  %v837_v50 = vpack.c.bf16 %v282_v48, %v280_v47 }
 0x1e4   :  { %836 = vmatpush1.bf16.msra.mxu0 %v835_v49 }
 0x1e5   :  { %838 = vmatprep.subr.bf16.mxu0 %v837_v50 }
 0x1ec   :  { %v907_v51 = vpop.eup %906 }
 0x1ed   :  { %v146_v52 = vmul.f32 0.5, %v907_v51  ;;  %v909_v54 = vpop.eup %908  ;;  %v279_v51 = vld [vmem:[%s1320_s1 + $0x140] sm:$0xff] }
 0x1ef   :  { %v147_v53 = vadd.f32 0.5, %v146_v52  ;;  %v281_v52 = vld [vmem:[%s1320_s1 + $0x150] sm:$0xff] }
 0x1f1   :  { %v148_v55 = vmul.f32 %v909_v54, %v147_v53  ;;  %v286_v54 = vld [vmem:[%s1320_s1 + $0x178] sm:$0xff] }
 0x1f3   :  { %910 = vtanh.f32 %v148_v55  ;;  %v839_v55 = vpack.c.bf16 %v281_v52, %v279_v51 }
 0x1f5   :  { %840 = vmatpush1.bf16.msra.mxu0 %v839_v55 }
 0x1fd   :  { %v911_v15 = vpop.eup %910 }
 0x1fe   :  { %151 = vrot.lane.b32.xlu1 %v911_v15, %s955_s14  ;;  %v845_v15 = vpack.c.bf16 %v390_v13, %v388_v12  ;;  %v594_v12 = vld [vmem:[%s1320_s1 + $0x300] sm:$0xff]  ;;  %v595_v13 = vld [vmem:[%s1320_s1 + $0x310] sm:$0xff] }
 0x200   :  { %846 = vmatprep.subr.bf16.mxu1 %v845_v15 }
 0x270   :  { %v152_v18 = vpop.permute.xlu1 %151 }
 0x271   :  { %v154_v19 = vmul.f32 %v152_v18, %v147_v53  ;;  %v284_v53 = vld [vmem:[%s1320_s1 + $0x168] sm:$0xff] }
 0x272   :  { %v841_v56 = vpack.c.bf16 %v286_v54, %v284_v53  ;;  %v392_v18 = vld [vmem:[%s1320_s1 + $0x1a8] sm:$0xff] }
 0x273   :  { %174 = vrot.lane.b32.xlu1 %v154_v19, %s955_s14  ;;  %v394_v19 = vld [vmem:[%s1320_s1 + $0x1b8] sm:$0xff] }
 0x274   :  { %842 = vmatprep.subr.bf16.mxu0 %v841_v56  ;;  %v849_v21 = vpack.c.bf16 %v394_v19, %v392_v18  ;;  %v503_v56 = vld [vmem:[%s1320_s1 + $0x210] sm:$0xff]  ;;  %v596_v18 = vld [vmem:[%s1320_s1 + $0x320] sm:$0xff] }
 0x275   :  { %844 = vmatpush1.bf16.msra.mxu0 %v843_v60  ;;  %v862_v58 = vpack.c.bf16 %v504_v38, %v503_v56  ;;  %v597_v19 = vld [vmem:[%s1320_s1 + $0x330] sm:$0xff] }
 0x276   :  { %861 = vmatprep.subr.bf16.mxu0 %v956_v57 }
 0x2e5   :  { %v175_v20 = vpop.permute.xlu1 %174 }
 0x2e6   :  { %711 = vmatmul.mubr.msk.f32.vlgmr.msra.gmra.mrb[0].mxu1 %vm70_vm0, %v175_v20  ;;  %v847_v20 = vpack.c.bf16 %v389_v16, %v387_v14  ;;  %v883_v16 = vpack.c.bf16 %v595_v13, %v594_v12 }
 0x2e7   :  { %485 = vmatprep.mubr.f32.mxu1 %v954_v17 }
 0x2e8   :  { %848 = vmatpush1.bf16.msra.mxu1 %v847_v20  ;;  %v886_v20 = vpack.c.bf16 %v597_v19, %v596_v18 }
 0x2e9   :  { %850 = vmatprep.subr.bf16.mxu1 %v849_v21  ;;  %v598_v21 = vld [vmem:[%s1320_s1 + $0x340] sm:$0xff] }
 0x3b9   :  { %v255_v24 = vpop.f32.mrb[0].mxu1 }
 0x3ba   :  { %v256_v25 = vadd.f32 %v255_v24, %v180_v22  ;;  %v257_v26 = vpop.f32.mrb[1].mxu1  ;;  %v391_v22 = vld [vmem:[%s1320_s1 + $0x1a0] sm:$0xff]  ;;  %v396_v24 = vld [vmem:[%s1320_s1 + $0x1c8] sm:$0xff] }
 0x3bb   :  { %v258_v27 = vadd.f32 %v257_v26, %v184_v23  ;;  %v393_v23 = vld [vmem:[%s1320_s1 + $0x1b0] sm:$0xff] }
 0x3bc   :  { %912 = vtanh.f32 %v256_v25  ;;  %v398_v25 = vld [vmem:[%s1320_s1 + $0x1d8] sm:$0xff]  ;;  %v851_v26 = vpack.c.bf16 %v393_v23, %v391_v22  ;;  %v599_v22 = vld [vmem:[%s1320_s1 + $0x350] sm:$0xff] }
 0x3bd   :  { %914 = vtanh.f32 %v258_v27  ;;  %v853_v27 = vpack.c.bf16 %v398_v25, %v396_v24  ;;  %v889_v23 = vpack.c.bf16 %v599_v22, %v598_v21  ;;  %v600_v24 = vld [vmem:[%s1320_s1 + $0x360] sm:$0xff]  ;;  %v601_v25 = vld [vmem:[%s1320_s1 + $0x370] sm:$0xff] }
 0x3be   :  { %852 = vmatpush1.bf16.msra.mxu1 %v851_v26  ;;  %v892_v26 = vpack.c.bf16 %v601_v25, %v600_v24 }
 0x3bf   :  { %854 = vmatprep.subr.bf16.mxu1 %v853_v27 }
 0x3c6   :  { %v913_v28 = vpop.eup %912 }
 0x3c7   :  { %v262_v29 = vmul.f32 0.5, %v913_v28  ;;  %v915_v31 = vpop.eup %914  ;;  %v395_v28 = vld [vmem:[%s1320_s1 + $0x1c0] sm:$0xff] }
 0x3c9   :  { %v263_v30 = vadd.f32 0.5, %v262_v29  ;;  %v397_v29 = vld [vmem:[%s1320_s1 + $0x1d0] sm:$0xff] }
 0x3cb   :  { %v264_v32 = vmul.f32 %v915_v31, %v263_v30  ;;  %v402_v31 = vld [vmem:[%s1320_s1 + $0x1f8] sm:$0xff] }
 0x3cd   :  { %916 = vtanh.f32 %v264_v32  ;;  %v855_v32 = vpack.c.bf16 %v397_v29, %v395_v28  ;;  %v602_v28 = vld [vmem:[%s1320_s1 + $0x380] sm:$0xff]  ;;  %v603_v29 = vld [vmem:[%s1320_s1 + $0x390] sm:$0xff] }
 0x3cf   :  { %856 = vmatpush1.bf16.msra.mxu1 %v855_v32 }
 0x3d7   :  { %v917_v59 = vpop.eup %916 }
 0x3d8   :  { %267 = vrot.lane.b32.xlu0 %v917_v59, %s955_s14  ;;  %v506_v59 = vld [vmem:[%s1320_s1 + $0x240] sm:$0xff] }
 0x3d9   :  { %v865_v60 = vpack.c.bf16 %v506_v59, %v505_v44 }
 0x44a   :  { %v268_v61 = vpop.permute.xlu0 %267 }
 0x44b   :  { %v270_v62 = vmul.f32 %v268_v61, %v263_v30  ;;  %v400_v30 = vld [vmem:[%s1320_s1 + $0x1e8] sm:$0xff]  ;;  %v507_v61 = vld [vmem:[%s1320_s1 + $0x250] sm:$0xff] }
 0x44c   :  { %v857_v33 = vpack.c.bf16 %v402_v31, %v400_v30  ;;  %v895_v30 = vpack.c.bf16 %v603_v29, %v602_v28  ;;  %v511_v31 = vld [vmem:[%s1320_s1 + $0x290] ss:$0 sm:$0xff] }
 0x44d   :  { %290 = vrot.lane.b32.xlu1 %v270_v62, %s955_s14  ;;  %v508_v62 = vld [vmem:[%s1320_s1 + $0x260] sm:$0xff] }
 0x44e   :  { %858 = vmatprep.subr.bf16.mxu1 %v857_v33 }
 0x44f   :  { %860 = vmatpush1.bf16.msra.mxu1 %v859_v39 }
 0x450   :  { %873 = vmatprep.subr.bf16.mxu1 %v956_v57 }
 0x4bf   :  { %v291_v63 = vpop.permute.xlu1 %290 }
 0x4c0   :  { %713 = vmatmul.mubr.msk.f32.vlgmr.msra.gmra.mrb[2].mxu0 %vm70_vm0, %v291_v63  ;;  %v868_v63 = vpack.c.bf16 %v508_v62, %v507_v61 }
 0x4c1   :  { %759 = vmatprep.mubr.msk.f32.mxu0 %vm957_vm1, %v954_v17  ;;  %863 = vmatpush3.bf16.msra.mxu0 %v862_v58 }
 0x4c2   :  { %864 = vmatprep.subr.bf16.mxu0 %v956_v57 }
 0x4c5   :  { %866 = vmatpush3.bf16.msra.mxu0 %v865_v60 }
 0x4c6   :  { %867 = vmatprep.subr.bf16.mxu0 %v956_v57 }
 0x4c9   :  { %869 = vmatpush3.bf16.msra.mxu0 %v868_v63 }
 0x4ca   :  { %870 = vmatprep.subr.bf16.mxu0 %v956_v57 }
 0x593   :  { %v371_v3 = vpop.f32.mrb[2].mxu0 }
 0x594   :  { %v372_v4 = vadd.f32 %v371_v3, %v296_v1  ;;  %v373_v5 = vpop.f32.mrb[3].mxu0  ;;  %v588_v3 = vld [vmem:[%s1320_s1 + $0x2a0] sm:$0xff] }
 0x595   :  { %v374_v6 = vadd.f32 %v373_v5, %v300_v2  ;;  %v590_v5 = vld [vmem:[%s1320_s1 + $0x2c0] sm:$0xff] }
 0x596   :  { %918 = vtanh.f32 %v372_v4  ;;  %v589_v4 = vld [vmem:[%s1320_s1 + $0x2b0] sm:$0xff] }
 0x597   :  { %920 = vtanh.f32 %v374_v6  ;;  %v874_v6 = vpack.c.bf16 %v589_v4, %v588_v3 }
 0x5a0   :  { %v919_v7 = vpop.eup %918 }
 0x5a1   :  { %v378_v8 = vmul.f32 0.5, %v919_v7  ;;  %v921_v10 = vpop.eup %920  ;;  %v591_v7 = vld [vmem:[%s1320_s1 + $0x2d0] sm:$0xff] }
 0x5a3   :  { %v379_v9 = vadd.f32 0.5, %v378_v8  ;;  %v877_v8 = vpack.c.bf16 %v591_v7, %v590_v5 }
 0x5a5   :  { %v380_v11 = vmul.f32 %v921_v10, %v379_v9  ;;  %v593_v10 = vld [vmem:[%s1320_s1 + $0x2f0] sm:$0xff] }
 0x5a7   :  { %922 = vtanh.f32 %v380_v11 }
 0x5b1   :  { %v923_v37 = vpop.eup %922 }
 0x5b2   :  { %383 = vrot.lane.b32.xlu0 %v923_v37, %s955_s14  ;;  %v604_v37 = vld [vmem:[%s1320_s1 + $0x3a0] ss:$0 sm:$0xff] }
 0x624   :  { %v384_v40 = vpop.permute.xlu0 %383 }
 0x625   :  { %v386_v41 = vmul.f32 %v384_v40, %v379_v9  ;;  %v592_v9 = vld [vmem:[%s1320_s1 + $0x2e0] sm:$0xff] }
 0x626   :  { %v880_v11 = vpack.c.bf16 %v593_v10, %v592_v9 }
 0x627   :  { %406 = vrot.lane.b32.xlu1 %v386_v41, %s955_s14 }
 0x699   :  { %v407_v42 = vpop.permute.xlu1 %406 }
 0x69a   :  { %715 = vmatmul.mubr.msk.f32.vlgmr.msra.gmra.mrb[2].mxu1 %vm70_vm0, %v407_v42  ;;  %v676_v42 = vld [vmem:[%s1320_s1 + $0x3a1] ss:$0 sm:$0xff] }
 0x69b   :  { %794 = vmatprep.mubr.msk.f32.mxu1 %vm957_vm1, %v954_v17  ;;  %v510_v17 = vld [vmem:[%s1320_s1 + $0x280] sm:$0xff]  ;;  %875 = vmatpush3.bf16.msra.mxu1 %v874_v6 }
 0x69c   :  { %v871_v2 = vpack.c.bf16 %v510_v17, %v509_v0  ;;  %876 = vmatprep.subr.bf16.mxu1 %v956_v57 }
 0x69e   :  { %872 = vmatpush3.bf16.msra.mxu0 %v871_v2 }
 0x69f   :  { %878 = vmatpush3.bf16.msra.mxu1 %v877_v8 }
 0x6a0   :  { %879 = vmatprep.subr.bf16.mxu1 %v956_v57 }
 0x6a3   :  { %881 = vmatpush3.bf16.msra.mxu1 %v880_v11 }
 0x6a4   :  { %882 = vmatprep.subr.bf16.mxu1 %v956_v57 }
 0x6a7   :  { %884 = vmatpush3.bf16.msra.mxu1 %v883_v16 }
 0x6a8   :  { %885 = vmatprep.subr.bf16.mxu1 %v956_v57 }
 0x6ab   :  { %887 = vmatpush3.bf16.msra.mxu1 %v886_v20 }
 0x6ac   :  { %888 = vmatprep.subr.bf16.mxu1 %v956_v57 }
 0x6af   :  { %890 = vmatpush3.bf16.msra.mxu1 %v889_v23 }
 0x6b0   :  { %891 = vmatprep.subr.bf16.mxu1 %v956_v57 }
 0x6b3   :  { %893 = vmatpush3.bf16.msra.mxu1 %v892_v26 }
 0x6b4   :  { %894 = vmatprep.subr.bf16.mxu1 %v956_v57 }
 0x6b7   :  { %896 = vmatpush3.bf16.msra.mxu1 %v895_v30 }
 0x76d   :  { %v487_v47 = vpop.f32.mrb[2].mxu1 }
 0x76e   :  { %v488_v48 = vadd.f32 %v487_v47, %v412_v45  ;;  %v489_v49 = vpop.f32.mrb[3].mxu1  ;;  %v683_v47 = vand.u32 127, %v53_v36 }
 0x76f   :  { %v490_v50 = vadd.f32 %v489_v49, %v416_v46 }
 0x770   :  { %924 = vtanh.f32 %v488_v48  ;;  %vm684_vm3 = vcmp.lt.s32.totalorder %v683_v47, 2  ;;  %vm686_vm4 = vcmp.eq.s32.totalorder %v683_v47, 2 }
 0x771   :  { %926 = vtanh.f32 %v490_v50 }
 0x77a   :  { %v925_v51 = vpop.eup %924 }
 0x77b   :  { %v494_v52 = vmul.f32 0.5, %v925_v51  ;;  %v927_v54 = vpop.eup %926  ;;  %v689_v51 = vld [vmem:[%s1320_s1 + $0x3a2] ss:$0 sm:$0xff] }
 0x77d   :  { %v495_v53 = vadd.f32 0.5, %v494_v52 }
 0x77f   :  { %v496_v55 = vmul.f32 %v927_v54, %v495_v53 }
 0x781   :  { %928 = vtanh.f32 %v496_v55 }
 0x78b   :  { %v929_v1 = vpop.eup %928 }
 0x78c   :  { %499 = vrot.lane.b32.xlu0 %v929_v1, %s955_s14 }
 0x7fe   :  { %v500_v14 = vpop.permute.xlu0 %499 }
 0x7ff   :  { %v502_v15 = vmul.f32 %v500_v14, %v495_v53 }
 0x801   :  { %513 = vrot.lane.b32.xlu1 %v502_v15, %s955_s14 }
 0x873   :  { %v514_v27 = vpop.permute.xlu1 %513 }
 0x874   :  { %760 = vmatmul.mubr.msk.f32.vlgmr.msra.gmra.mrb[4].mxu0 %vm70_vm0, %v514_v27 }
 0x947   :  { %v583_v32 = vpop.f32.mrb[4].mxu0 }
 0x948   :  { %v584_v33 = vadd.f32 %v583_v32, %v511_v31  ;;  %v761_v34 = vpop.f32.mrb[5].mxu0 }
 0x94a   :  { %v587_v35 = vmax.f32 %v584_v33, 0.0 }
 0x94c   :  { %795 = vmatmul.mubr.f32.vlgmr.msra.gmra.mrb[4].mxu1 %v587_v35 }
 0xa1f   :  { %v671_v39 = vpop.f32.mrb[4].mxu1 }
 0xa20   :  { %v672_v40 = vadd.f32 %v671_v39, %v604_v37  ;;  %v796_v41 = vpop.f32.mrb[5].mxu1 }
 0xa22   :  { %v675_v43 = vmax.f32 %v672_v40, 0.0  ;;  %v685_v49 = vsel %vm684_vm3, %v672_v40, 0.0 }
 0xa24   :  { %v677_v45 = vmul.f32 %v676_v42, %v675_v43 }
 0xa26   :  { %v679_v46 = vsel %vm678_vm2, %v677_v45, 0.0 }
 0xa27   :  { %680 = vadd.xlane.f32.xlu0 %v679_v46 }
 0xab4   :  { %v681_v48 = vpop.xlane.xlu0 %680 }
 0xab5   :  { %v687_v50 = vsel %vm686_vm4, %v681_v48, 0.0 }
 0xab6   :  { %v688_v52 = vadd.f32 %v687_v50, %v685_v49 }
 0xab8   :  { %v690_v53 = vadd.f32 %v689_v51, %v688_v52 }
 0xaba   :  { %691 = vst [vmem:[#allocation3] sm:$0x1] %v690_v53 }
 0xabb   :  { %941 = shalt.err (!%p938_p4)
}
 0xabc   :  { %s942_s16 = scalar_lea.hbm %s1321_s2, 16 }
 0xabd   :  { %p943_p5 = scmp.ne.s32.totalorder %s1321_s2, %s942_s16  ;;  %p946_p6 = scmp.lt.u32.totalorder %s942_s16, %s1321_s2 }
 0xabf   :  { %p948_p7 = pnand %p946_p6, %p943_p5 }
 0xac1   :  { %951 = shalt.err (!%p948_p7)
}
 0xac2   :  { %701 = dma.vmem_to_hbm [thread:$0]  %s699_s10, 16, %s1321_s2, [#allocation4]  }
 0xac3   :  { %952 = dma.done.wait [#allocation4], 16  }
 0xac4   :  { %953 = vsyncadd [#allocation4], 4294967280 }
 0xac5   :  { %705 = vsyncpa [#allocation4], 1 }

</bundles_post_ra>
